<compile_context>
chip_gen: v6e
topology: v6e:2x2x1
jax: 0.10.0
libtpu: 0.0.40
codegen_flags: <defaults>
</compile_context>

<pallas_src>
import jax
import jax.numpy as jnp
from jax import lax
from jax.experimental import pallas as pl
from jax.experimental.pallas import tpu as pltpu


def _round_up(n, m):
    return ((n + m - 1) // m) * m


def _layer_norm(v, g, b, eps=1e-5):
    mu = jnp.mean(v, axis=-1, keepdims=True)
    var = jnp.mean((v - mu) ** 2, axis=-1, keepdims=True)
    return (v - mu) * lax.rsqrt(var + eps) * g + b


def baseline_kernel(x_ref, invlen_ref,
                    wp_ref, bp_ref, g_bn_ref, b_bn_ref,
                    w1_ref, b1_ref, w2_ref, b2_ref, g_ln_ref, b_ln_ref,
                    wfc_ref, bfc_ref, out_ref):
    # Hoist the small (1, H)/(1, C) params once per grid step.
    bp = bp_ref[...]
    g_bn = g_bn_ref[...]
    b_bn = b_bn_ref[...]
    b1 = b1_ref[...]
    b2 = b2_ref[...]
    g_ln = g_ln_ref[...]
    b_ln = b_ln_ref[...]
    bfc = bfc_ref[...]

    # Token pooling BEFORE the projection (exact because the projector is affine).
    # Padded tokens are zero, so the plain sum is the sum over real tokens.
    x_sum = jnp.sum(x_ref[...], axis=1)                     # (TB, Din)
    inv_len = invlen_ref[...]                                # (TB, 1)

    # projector + mean:  (sum_t x_t) @ Wp * (1/len) + bp
    pooled = (jnp.dot(x_sum, wp_ref[...],
                      preferred_element_type=jnp.float32) * inv_len + bp)

    # self.bn (LayerNorm over hidden dim)
    h = _layer_norm(pooled, g_bn, b_bn)

    # self.lin: Linear -> ReLU -> Linear -> LayerNorm
    h1 = jnp.dot(h, w1_ref[...], preferred_element_type=jnp.float32) + b1
    h1 = jnp.maximum(h1, 0.0)
    h2 = jnp.dot(h1, w2_ref[...], preferred_element_type=jnp.float32) + b2
    h2 = _layer_norm(h2, g_ln, b_ln)

    # self.fc
    out_ref[...] = (jnp.dot(h2, wfc_ref[...],
                            preferred_element_type=jnp.float32) + bfc
                    ).astype(out_ref.dtype)


def baseline_forward(embeds, params, *, block_b=128):
    """embeds: list of (L_i, Din) float arrays (L_i may differ).
    params: dict of (in, out)-layout weights / (1, out) biases."""
    B = len(embeds)
    Din = embeds[0].shape[-1]
    S = max(int(e.shape[0]) for e in embeds)
    H = params['wp'].shape[1]
    C = params['wfc'].shape[1]

    # Zero-pad each item to S tokens (zeros are neutral for the token SUM) and
    # stack; per-item 1/len finishes the mean inside the kernel.
    x = jnp.stack(
        [jnp.pad(e.astype(jnp.float32), ((0, S - e.shape[0]), (0, 0)))
         for e in embeds], axis=0)                           # (B, S, Din)
    inv_len = jnp.array([[1.0 / e.shape[0]] for e in embeds],
                        jnp.float32)                         # (B, 1)

    # Batch tile: multiple of 8 (sublane-legal out block) sized for VMEM.
    TB = min(block_b, _round_up(B, 8))
    B_pad = _round_up(B, TB)
    if B_pad != B:
        x = jnp.pad(x, ((0, B_pad - B), (0, 0), (0, 0)))
        # inv_len = 1 for padded rows (keeps the math finite; rows are dropped).
        inv_len = jnp.pad(inv_len, ((0, B_pad - B), (0, 0)), constant_values=1.0)

    def const2d(i):
        return (0, 0)

    grid_spec = pltpu.PrefetchScalarGridSpec(
        num_scalar_prefetch=0,
        grid=(B_pad // TB,),
        in_specs=[
            pl.BlockSpec((TB, S, Din), lambda i: (i, 0, 0)),   # x (streamed)
            pl.BlockSpec((TB, 1), lambda i: (i, 0)),           # 1/len (streamed)
            pl.BlockSpec((Din, H), const2d),                   # wp (resident)
            pl.BlockSpec((1, H), const2d),                     # bp
            pl.BlockSpec((1, H), const2d),                     # g_bn
            pl.BlockSpec((1, H), const2d),                     # b_bn
            pl.BlockSpec((H, H), const2d),                     # w1
            pl.BlockSpec((1, H), const2d),                     # b1
            pl.BlockSpec((H, H), const2d),                     # w2
            pl.BlockSpec((1, H), const2d),                     # b2
            pl.BlockSpec((1, H), const2d),                     # g_ln
            pl.BlockSpec((1, H), const2d),                     # b_ln
            pl.BlockSpec((H, C), const2d),                     # wfc
            pl.BlockSpec((1, C), const2d),                     # bfc
        ],
        out_specs=pl.BlockSpec((TB, C), lambda i: (i, 0)),
    )

    out = pl.pallas_call(
        baseline_kernel,
        out_shape=jax.ShapeDtypeStruct((B_pad, C), jnp.float32),
        grid_spec=grid_spec,
        compiler_params=pltpu.CompilerParams(
            dimension_semantics=("parallel",)),                # megacore / v7x 2-TC
    )(x, inv_len,
      params['wp'], params['bp'],
      params['g_bn'], params['b_bn'],
      params['w1'], params['b1'],
      params['w2'], params['b2'],
      params['g_ln'], params['b_ln'],
      params['wfc'], params['bfc'])

    return out[:B]


def make_params(key, input_dim, hidden_dim, num_classes):
    ks = jax.random.split(key, 6)
    s_in = 1.0 / (input_dim ** 0.5)
    s_h = 1.0 / (hidden_dim ** 0.5)
    # weights stored as (in, out) == PyTorch weight.T ; biases as (1, out)
    return dict(
        wp=jax.random.normal(ks[0], (input_dim, hidden_dim), jnp.float32) * s_in,
        bp=jax.random.normal(ks[1], (1, hidden_dim), jnp.float32) * 0.01,
        g_bn=jnp.ones((1, hidden_dim), jnp.float32),
        b_bn=jnp.zeros((1, hidden_dim), jnp.float32),
        w1=jax.random.normal(ks[2], (hidden_dim, hidden_dim), jnp.float32) * s_h,
        b1=jax.random.normal(ks[3], (1, hidden_dim), jnp.float32) * 0.01,
        w2=jax.random.normal(ks[4], (hidden_dim, hidden_dim), jnp.float32) * s_h,
        b2=jnp.zeros((1, hidden_dim), jnp.float32),
        g_ln=jnp.ones((1, hidden_dim), jnp.float32),
        b_ln=jnp.zeros((1, hidden_dim), jnp.float32),
        wfc=jax.random.normal(ks[5], (hidden_dim, num_classes), jnp.float32) * s_h,
        bfc=jnp.zeros((1, num_classes), jnp.float32),
    )


def reference_forward(embeds, p):
    # Pure-JAX mirror of the PyTorch forward (per-item projection then mean).
    pooled = jnp.stack(
        [jnp.mean(e @ p['wp'] + p['bp'], axis=0) for e in embeds], axis=0)
    x = _layer_norm(pooled, p['g_bn'], p['b_bn'])
    x = jnp.maximum(x @ p['w1'] + p['b1'], 0.0)
    x = _layer_norm(x @ p['w2'] + p['b2'], p['g_ln'], p['b_ln'])
    return x @ p['wfc'] + p['bfc']


if __name__ == "__main__":
    # Small shapes consistent with the module's structure; variable-length items
    # exercise the faithful list-of-tensors (per-item mean) semantics.
    INPUT_DIM, HIDDEN_DIM, NUM_CLASSES = 256, 128, 128
    lengths = [8, 5]                                      # B = 2, ragged tokens

    key = jax.random.PRNGKey(0)
    k_x, k_p = jax.random.split(key)

    embeds = [jax.random.normal(jax.random.fold_in(k_x, i), (L, INPUT_DIM),
                                jnp.float32) for i, L in enumerate(lengths)]
    params = make_params(k_p, INPUT_DIM, HIDDEN_DIM, NUM_CLASSES)

    out = baseline_forward(embeds, params)
    out = jax.block_until_ready(out)

    ref = reference_forward(embeds, params)
    assert out.shape == (len(lengths), NUM_CLASSES)
    assert jnp.allclose(out, ref, rtol=1e-3, atol=1e-3), "mismatch vs JAX reference"

    print("KERNEL_OK")
</pallas_src>

<mosaic_0001>
module attributes {stable_mosaic.version = 11 : i64} {
  func.func @baseline_kernel(%arg0: i32, %arg1: memref<8x8x256xf32, #tpu.memory_space<vmem>>, %arg2: memref<8x1xf32, #tpu.memory_space<vmem>>, %arg3: memref<256x128xf32, #tpu.memory_space<vmem>>, %arg4: memref<1x128xf32, #tpu.memory_space<vmem>>, %arg5: memref<1x128xf32, #tpu.memory_space<vmem>>, %arg6: memref<1x128xf32, #tpu.memory_space<vmem>>, %arg7: memref<128x128xf32, #tpu.memory_space<vmem>>, %arg8: memref<1x128xf32, #tpu.memory_space<vmem>>, %arg9: memref<128x128xf32, #tpu.memory_space<vmem>>, %arg10: memref<1x128xf32, #tpu.memory_space<vmem>>, %arg11: memref<1x128xf32, #tpu.memory_space<vmem>>, %arg12: memref<1x128xf32, #tpu.memory_space<vmem>>, %arg13: memref<128x128xf32, #tpu.memory_space<vmem>>, %arg14: memref<1x128xf32, #tpu.memory_space<vmem>>, %arg15: memref<8x128xf32, #tpu.memory_space<vmem>>) attributes {dimension_semantics = [#tpu.dimension_semantics<parallel>], iteration_bounds = array<i64: 1>, scalar_prefetch = 0 : i64, scratch_operands = 0 : i64, tpu.core_type = #tpu.core_type<tc>, window_params = [{transform_indices = @transform_0, window_bounds = array<i64: 8, 8, 256>}, {transform_indices = @transform_1, window_bounds = array<i64: 8, 1>}, {pipeline_mode = #tpu.pipeline_mode<synchronous>, transform_indices = @transform_2, window_bounds = array<i64: 256, 128>}, {pipeline_mode = #tpu.pipeline_mode<synchronous>, transform_indices = @transform_3, window_bounds = array<i64: 1, 128>}, {pipeline_mode = #tpu.pipeline_mode<synchronous>, transform_indices = @transform_4, window_bounds = array<i64: 1, 128>}, {pipeline_mode = #tpu.pipeline_mode<synchronous>, transform_indices = @transform_5, window_bounds = array<i64: 1, 128>}, {pipeline_mode = #tpu.pipeline_mode<synchronous>, transform_indices = @transform_6, window_bounds = array<i64: 128, 128>}, {pipeline_mode = #tpu.pipeline_mode<synchronous>, transform_indices = @transform_7, window_bounds = array<i64: 1, 128>}, {pipeline_mode = #tpu.pipeline_mode<synchronous>, transform_indices = @transform_8, window_bounds = array<i64: 128, 128>}, {pipeline_mode = #tpu.pipeline_mode<synchronous>, transform_indices = @transform_9, window_bounds = array<i64: 1, 128>}, {pipeline_mode = #tpu.pipeline_mode<synchronous>, transform_indices = @transform_10, window_bounds = array<i64: 1, 128>}, {pipeline_mode = #tpu.pipeline_mode<synchronous>, transform_indices = @transform_11, window_bounds = array<i64: 1, 128>}, {pipeline_mode = #tpu.pipeline_mode<synchronous>, transform_indices = @transform_12, window_bounds = array<i64: 128, 128>}, {pipeline_mode = #tpu.pipeline_mode<synchronous>, transform_indices = @transform_13, window_bounds = array<i64: 1, 128>}, {transform_indices = @transform_14, window_bounds = array<i64: 8, 128>}]} {
    %c0 = arith.constant 0 : index
    %c0_0 = arith.constant 0 : index
    %0 = vector.load %arg4[%c0, %c0_0] : memref<1x128xf32, #tpu.memory_space<vmem>>, vector<1x128xf32>
    %c0_1 = arith.constant 0 : index
    %c0_2 = arith.constant 0 : index
    %1 = vector.load %arg5[%c0_1, %c0_2] : memref<1x128xf32, #tpu.memory_space<vmem>>, vector<1x128xf32>
    %c0_3 = arith.constant 0 : index
    %c0_4 = arith.constant 0 : index
    %2 = vector.load %arg6[%c0_3, %c0_4] : memref<1x128xf32, #tpu.memory_space<vmem>>, vector<1x128xf32>
    %c0_5 = arith.constant 0 : index
    %c0_6 = arith.constant 0 : index
    %3 = vector.load %arg8[%c0_5, %c0_6] : memref<1x128xf32, #tpu.memory_space<vmem>>, vector<1x128xf32>
    %c0_7 = arith.constant 0 : index
    %c0_8 = arith.constant 0 : index
    %4 = vector.load %arg10[%c0_7, %c0_8] : memref<1x128xf32, #tpu.memory_space<vmem>>, vector<1x128xf32>
    %c0_9 = arith.constant 0 : index
    %c0_10 = arith.constant 0 : index
    %5 = vector.load %arg11[%c0_9, %c0_10] : memref<1x128xf32, #tpu.memory_space<vmem>>, vector<1x128xf32>
    %c0_11 = arith.constant 0 : index
    %c0_12 = arith.constant 0 : index
    %6 = vector.load %arg12[%c0_11, %c0_12] : memref<1x128xf32, #tpu.memory_space<vmem>>, vector<1x128xf32>
    %c0_13 = arith.constant 0 : index
    %c0_14 = arith.constant 0 : index
    %7 = vector.load %arg14[%c0_13, %c0_14] : memref<1x128xf32, #tpu.memory_space<vmem>>, vector<1x128xf32>
    %c0_15 = arith.constant 0 : index
    %c0_16 = arith.constant 0 : index
    %c0_17 = arith.constant 0 : index
    %8 = vector.load %arg1[%c0_15, %c0_16, %c0_17] : memref<8x8x256xf32, #tpu.memory_space<vmem>>, vector<8x8x256xf32>
    %cst = arith.constant dense<0.000000e+00> : vector<8x256xf32>
    %9 = vector.multi_reduction <add>, %8, %cst [1] : vector<8x8x256xf32> to vector<8x256xf32>
    %c0_18 = arith.constant 0 : index
    %c0_19 = arith.constant 0 : index
    %10 = vector.load %arg2[%c0_18, %c0_19] : memref<8x1xf32, #tpu.memory_space<vmem>>, vector<8x1xf32>
    %c0_20 = arith.constant 0 : index
    %c0_21 = arith.constant 0 : index
    %11 = vector.load %arg3[%c0_20, %c0_21] : memref<256x128xf32, #tpu.memory_space<vmem>>, vector<256x128xf32>
    %cst_22 = arith.constant dense<0.000000e+00> : vector<8x128xf32>
    %12 = tpu.matmul %9, %11, %cst_22 {dimension_numbers = #tpu.dot_dimension_numbers<[1], [0], [0], [1], [0, 0, 1, 1], [], []>} : vector<8x256xf32>, vector<256x128xf32>, vector<8x128xf32> -> vector<8x128xf32>
    %13 = vector.broadcast %10 : vector<8x1xf32> to vector<8x128xf32>
    %14 = arith.mulf %12, %13 : vector<8x128xf32>
    %15 = vector.broadcast %0 : vector<1x128xf32> to vector<8x128xf32>
    %16 = arith.addf %14, %15 : vector<8x128xf32>
    %cst_23 = arith.constant dense<0.000000e+00> : vector<8xf32>
    %17 = vector.multi_reduction <add>, %16, %cst_23 [1] : vector<8x128xf32> to vector<8xf32>
    %18 = vector.shape_cast %17 : vector<8xf32> to vector<8x1xf32>
    %cst_24 = arith.constant 1.280000e+02 : f32
    %19 = vector.broadcast %cst_24 : f32 to vector<8x1xf32>
    %20 = arith.divf %18, %19 : vector<8x1xf32>
    %21 = vector.broadcast %20 : vector<8x1xf32> to vector<8x128xf32>
    %22 = arith.subf %16, %21 : vector<8x128xf32>
    %23 = arith.mulf %22, %22 : vector<8x128xf32>
    %cst_25 = arith.constant dense<0.000000e+00> : vector<8xf32>
    %24 = vector.multi_reduction <add>, %23, %cst_25 [1] : vector<8x128xf32> to vector<8xf32>
    %25 = vector.shape_cast %24 : vector<8xf32> to vector<8x1xf32>
    %cst_26 = arith.constant 1.280000e+02 : f32
    %26 = vector.broadcast %cst_26 : f32 to vector<8x1xf32>
    %27 = arith.divf %25, %26 : vector<8x1xf32>
    %28 = vector.broadcast %20 : vector<8x1xf32> to vector<8x128xf32>
    %29 = arith.subf %16, %28 : vector<8x128xf32>
    %cst_27 = arith.constant 9.99999974E-6 : f32
    %30 = vector.broadcast %cst_27 : f32 to vector<8x1xf32>
    %31 = arith.addf %27, %30 : vector<8x1xf32>
    %32 = math.rsqrt %31 : vector<8x1xf32>
    %33 = vector.broadcast %32 : vector<8x1xf32> to vector<8x128xf32>
    %34 = arith.mulf %29, %33 : vector<8x128xf32>
    %35 = vector.broadcast %1 : vector<1x128xf32> to vector<8x128xf32>
    %36 = arith.mulf %34, %35 : vector<8x128xf32>
    %37 = vector.broadcast %2 : vector<1x128xf32> to vector<8x128xf32>
    %38 = arith.addf %36, %37 : vector<8x128xf32>
    %c0_28 = arith.constant 0 : index
    %c0_29 = arith.constant 0 : index
    %39 = vector.load %arg7[%c0_28, %c0_29] : memref<128x128xf32, #tpu.memory_space<vmem>>, vector<128x128xf32>
    %cst_30 = arith.constant dense<0.000000e+00> : vector<8x128xf32>
    %40 = tpu.matmul %38, %39, %cst_30 {dimension_numbers = #tpu.dot_dimension_numbers<[1], [0], [0], [1], [0, 0, 1, 1], [], []>} : vector<8x128xf32>, vector<128x128xf32>, vector<8x128xf32> -> vector<8x128xf32>
    %41 = vector.broadcast %3 : vector<1x128xf32> to vector<8x128xf32>
    %42 = arith.addf %40, %41 : vector<8x128xf32>
    %cst_31 = arith.constant 0.000000e+00 : f32
    %43 = vector.broadcast %cst_31 : f32 to vector<8x128xf32>
    %44 = arith.maximumf %42, %43 : vector<8x128xf32>
    %c0_32 = arith.constant 0 : index
    %c0_33 = arith.constant 0 : index
    %45 = vector.load %arg9[%c0_32, %c0_33] : memref<128x128xf32, #tpu.memory_space<vmem>>, vector<128x128xf32>
    %cst_34 = arith.constant dense<0.000000e+00> : vector<8x128xf32>
    %46 = tpu.matmul %44, %45, %cst_34 {dimension_numbers = #tpu.dot_dimension_numbers<[1], [0], [0], [1], [0, 0, 1, 1], [], []>} : vector<8x128xf32>, vector<128x128xf32>, vector<8x128xf32> -> vector<8x128xf32>
    %47 = vector.broadcast %4 : vector<1x128xf32> to vector<8x128xf32>
    %48 = arith.addf %46, %47 : vector<8x128xf32>
    %cst_35 = arith.constant dense<0.000000e+00> : vector<8xf32>
    %49 = vector.multi_reduction <add>, %48, %cst_35 [1] : vector<8x128xf32> to vector<8xf32>
    %50 = vector.shape_cast %49 : vector<8xf32> to vector<8x1xf32>
    %cst_36 = arith.constant 1.280000e+02 : f32
    %51 = vector.broadcast %cst_36 : f32 to vector<8x1xf32>
    %52 = arith.divf %50, %51 : vector<8x1xf32>
    %53 = vector.broadcast %52 : vector<8x1xf32> to vector<8x128xf32>
    %54 = arith.subf %48, %53 : vector<8x128xf32>
    %55 = arith.mulf %54, %54 : vector<8x128xf32>
    %cst_37 = arith.constant dense<0.000000e+00> : vector<8xf32>
    %56 = vector.multi_reduction <add>, %55, %cst_37 [1] : vector<8x128xf32> to vector<8xf32>
    %57 = vector.shape_cast %56 : vector<8xf32> to vector<8x1xf32>
    %cst_38 = arith.constant 1.280000e+02 : f32
    %58 = vector.broadcast %cst_38 : f32 to vector<8x1xf32>
    %59 = arith.divf %57, %58 : vector<8x1xf32>
    %60 = vector.broadcast %52 : vector<8x1xf32> to vector<8x128xf32>
    %61 = arith.subf %48, %60 : vector<8x128xf32>
    %cst_39 = arith.constant 9.99999974E-6 : f32
    %62 = vector.broadcast %cst_39 : f32 to vector<8x1xf32>
    %63 = arith.addf %59, %62 : vector<8x1xf32>
    %64 = math.rsqrt %63 : vector<8x1xf32>
    %65 = vector.broadcast %64 : vector<8x1xf32> to vector<8x128xf32>
    %66 = arith.mulf %61, %65 : vector<8x128xf32>
    %67 = vector.broadcast %5 : vector<1x128xf32> to vector<8x128xf32>
    %68 = arith.mulf %66, %67 : vector<8x128xf32>
    %69 = vector.broadcast %6 : vector<1x128xf32> to vector<8x128xf32>
    %70 = arith.addf %68, %69 : vector<8x128xf32>
    %c0_40 = arith.constant 0 : index
    %c0_41 = arith.constant 0 : index
    %71 = vector.load %arg13[%c0_40, %c0_41] : memref<128x128xf32, #tpu.memory_space<vmem>>, vector<128x128xf32>
    %cst_42 = arith.constant dense<0.000000e+00> : vector<8x128xf32>
    %72 = tpu.matmul %70, %71, %cst_42 {dimension_numbers = #tpu.dot_dimension_numbers<[1], [0], [0], [1], [0, 0, 1, 1], [], []>} : vector<8x128xf32>, vector<128x128xf32>, vector<8x128xf32> -> vector<8x128xf32>
    %73 = vector.broadcast %7 : vector<1x128xf32> to vector<8x128xf32>
    %74 = arith.addf %72, %73 : vector<8x128xf32>
    %c0_43 = arith.constant 0 : index
    %c0_44 = arith.constant 0 : index
    %75 = vector.load %arg15[%c0_43, %c0_44] : memref<8x128xf32, #tpu.memory_space<vmem>>, vector<8x128xf32>
    tpu.vector_store %arg15[%c0_43, %c0_44], %74 {strides = array<i32>} : memref<8x128xf32, #tpu.memory_space<vmem>>, vector<8x128xf32>,
    return
  }
  func.func @transform_0(%arg0: i32) -> (i32, i32, i32) {
    %c0_i32 = arith.constant 0 : i32
    %c0_i32_0 = arith.constant 0 : i32
    %c0_i32_1 = arith.constant 0 : i32
    return %arg0, %c0_i32, %c0_i32_0 : i32, i32, i32
  }
  func.func @transform_1(%arg0: i32) -> (i32, i32) {
    %c0_i32 = arith.constant 0 : i32
    %c0_i32_0 = arith.constant 0 : i32
    return %arg0, %c0_i32 : i32, i32
  }
  func.func @transform_2(%arg0: i32) -> (i32, i32) {
    %c0_i32 = arith.constant 0 : i32
    %c0_i32_0 = arith.constant 0 : i32
    %c0_i32_1 = arith.constant 0 : i32
    return %c0_i32, %c0_i32_0 : i32, i32
  }
  func.func @transform_3(%arg0: i32) -> (i32, i32) {
    %c0_i32 = arith.constant 0 : i32
    %c0_i32_0 = arith.constant 0 : i32
    %c0_i32_1 = arith.constant 0 : i32
    return %c0_i32, %c0_i32_0 : i32, i32
  }
  func.func @transform_4(%arg0: i32) -> (i32, i32) {
    %c0_i32 = arith.constant 0 : i32
    %c0_i32_0 = arith.constant 0 : i32
    %c0_i32_1 = arith.constant 0 : i32
    return %c0_i32, %c0_i32_0 : i32, i32
  }
  func.func @transform_5(%arg0: i32) -> (i32, i32) {
    %c0_i32 = arith.constant 0 : i32
    %c0_i32_0 = arith.constant 0 : i32
    %c0_i32_1 = arith.constant 0 : i32
    return %c0_i32, %c0_i32_0 : i32, i32
  }
  func.func @transform_6(%arg0: i32) -> (i32, i32) {
    %c0_i32 = arith.constant 0 : i32
    %c0_i32_0 = arith.constant 0 : i32
    %c0_i32_1 = arith.constant 0 : i32
    return %c0_i32, %c0_i32_0 : i32, i32
  }
  func.func @transform_7(%arg0: i32) -> (i32, i32) {
    %c0_i32 = arith.constant 0 : i32
    %c0_i32_0 = arith.constant 0 : i32
    %c0_i32_1 = arith.constant 0 : i32
    return %c0_i32, %c0_i32_0 : i32, i32
  }
  func.func @transform_8(%arg0: i32) -> (i32, i32) {
    %c0_i32 = arith.constant 0 : i32
    %c0_i32_0 = arith.constant 0 : i32
    %c0_i32_1 = arith.constant 0 : i32
    return %c0_i32, %c0_i32_0 : i32, i32
  }
  func.func @transform_9(%arg0: i32) -> (i32, i32) {
    %c0_i32 = arith.constant 0 : i32
    %c0_i32_0 = arith.constant 0 : i32
    %c0_i32_1 = arith.constant 0 : i32
    return %c0_i32, %c0_i32_0 : i32, i32
  }
  func.func @transform_10(%arg0: i32) -> (i32, i32) {
    %c0_i32 = arith.constant 0 : i32
    %c0_i32_0 = arith.constant 0 : i32
    %c0_i32_1 = arith.constant 0 : i32
    return %c0_i32, %c0_i32_0 : i32, i32
  }
  func.func @transform_11(%arg0: i32) -> (i32, i32) {
    %c0_i32 = arith.constant 0 : i32
    %c0_i32_0 = arith.constant 0 : i32
    %c0_i32_1 = arith.constant 0 : i32
    return %c0_i32, %c0_i32_0 : i32, i32
  }
  func.func @transform_12(%arg0: i32) -> (i32, i32) {
    %c0_i32 = arith.constant 0 : i32
    %c0_i32_0 = arith.constant 0 : i32
    %c0_i32_1 = arith.constant 0 : i32
    return %c0_i32, %c0_i32_0 : i32, i32
  }
  func.func @transform_13(%arg0: i32) -> (i32, i32) {
    %c0_i32 = arith.constant 0 : i32
    %c0_i32_0 = arith.constant 0 : i32
    %c0_i32_1 = arith.constant 0 : i32
    return %c0_i32, %c0_i32_0 : i32, i32
  }
  func.func @transform_14(%arg0: i32) -> (i32, i32) {
    %c0_i32 = arith.constant 0 : i32
    %c0_i32_0 = arith.constant 0 : i32
    return %arg0, %c0_i32 : i32, i32
  }
}

</mosaic_0001>

<bundles_post_ra>
// kernel: tpu_custom_call.1
= control target key start
LH: loop header
LB: loop body
LE: loop exit
PB: predicated region body
PF: predicated region fallthrough
CT: control target
= control target key end

     0   :  { %19 = vsyncpa [#allocation3], 0  ;;  %s1300_s0 = inlined_call_operand.hbm [shape: f32[8,8,256], index: 0, kind: input, shape index: {}]   ;;  %s1301_s1 = inlined_call_operand.vmem [shape: f32[8,1], index: 1, kind: input, shape index: {}]   ;;  %s1302_s2 = inlined_call_operand.hbm [shape: f32[256,128], index: 2, kind: input, shape index: {}]   ;;  %s1303_s3 = inlined_call_operand.vmem [shape: f32[1,128], index: 3, kind: input, shape index: {}]   ;;  %s1304_s4 = inlined_call_operand.vmem [shape: f32[1,128], index: 4, kind: input, shape index: {}]   ;;  %s1305_s5 = inlined_call_operand.vmem [shape: f32[1,128], index: 5, kind: input, shape index: {}]   ;;  %s1306_s6 = inlined_call_operand.hbm [shape: f32[128,128], index: 6, kind: input, shape index: {}]   ;;  %s1307_s7 = inlined_call_operand.vmem [shape: f32[1,128], index: 7, kind: input, shape index: {}]   ;;  %s1308_s8 = inlined_call_operand.hbm [shape: f32[128,128], index: 8, kind: input, shape index: {}]   ;;  %s1309_s9 = inlined_call_operand.vmem [shape: f32[1,128], index: 9, kind: input, shape index: {}]   ;;  %s1310_s10 = inlined_call_operand.vmem [shape: f32[1,128], index: 10, kind: input, shape index: {}]   ;;  %s1311_s11 = inlined_call_operand.vmem [shape: f32[1,128], index: 11, kind: input, shape index: {}]   ;;  %s1312_s12 = inlined_call_operand.hbm [shape: f32[128,128], index: 12, kind: input, shape index: {}]   ;;  %s1313_s13 = inlined_call_operand.vmem [shape: f32[1,128], index: 13, kind: input, shape index: {}]   ;;  %s1314_s14 = inlined_call_operand.hbm [shape: f32[8,128], index: 14, kind: output, shape index: {}]  }
   0x1   :  { %20 = vsyncpa [#allocation6], 0 }
   0x2   :  { %21 = vsyncpa [#allocation9], 0 }
   0x3   :  { %22 = vsyncpa [#allocation4], 0  ;;  %s1082_s29 = smov [#allocation5]  }
   0x4   :  { %s42_s30 = sshll.u32 %s1082_s29, 4  ;;  %s43_s30 = int_to_ptr.vmem [resolvable:$true] %s42_s30 }
   0x5   :  { %s962_s15 = scalar_lea.vmem %s43_s30, 4096  ;;  %p967_p1 = scmp.lt.s32.totalorder %s43_s30, %s43_s30 }
   0x6   :  { %p963_p0 = scmp.ne.s32.totalorder %s43_s30, %s962_s15  ;;  %p968_p2 = scmp.lt.s32.totalorder %s962_s15, %s962_s15 }
   0x8   :  { %p969_p3 = por %p968_p2, %p967_p1 }
   0xa   :  { %p970_p4 = pnand %p969_p3, %p963_p0 }
   0xc   :  { %973 = shalt.err (!%p970_p4)
}
   0xd   :  { %s1083_s16 = smov 128   ;;  %s1084_s17 = smov 8  }
   0xe   :  { %48 = dma.hbm_to_vmem [thread:$0]  %s1302_s2, 4096, %s43_s30, [#allocation6], %s1083_s16, %s1083_s16, %s1084_s17  }
   0xf   :  { %s1085_s20 = smov [#allocation8]   ;;  %s1086_s22 = smov [#allocation2]  }
  0x10   :  { %s74_s21 = sshll.u32 %s1085_s20, 4  ;;  %s28_s23 = sshll.u32 %s1086_s22, 4  ;;  %s75_s21 = int_to_ptr.vmem [resolvable:$true] %s74_s21  ;;  %s29_s23 = int_to_ptr.vmem [resolvable:$true] %s28_s23 }
  0x11   :  { %s982_s24 = scalar_lea.vmem %s75_s21, 2048  ;;  %p987_p6 = scmp.lt.s32.totalorder %s75_s21, %s75_s21 }
  0x12   :  { %p983_p5 = scmp.ne.s32.totalorder %s75_s21, %s982_s24  ;;  %p988_p7 = scmp.lt.s32.totalorder %s982_s24, %s982_s24 }
  0x14   :  { %p989_p8 = por %p988_p7, %p987_p6 }
  0x16   :  { %p990_p9 = pnand %p989_p8, %p983_p5 }
  0x18   :  { %993 = shalt.err (!%p990_p9)
}
  0x19   :  { %80 = dma.hbm_to_vmem [thread:$0]  %s1308_s8, 2048, %s75_s21, [#allocation9], %s1083_s16, %s1083_s16, %s1084_s17  }
  0x1a   :  { %s1002_s2 = scalar_lea.vmem %s29_s23, 2048  ;;  %p1007_p11 = scmp.lt.s32.totalorder %s29_s23, %s29_s23 }
  0x1b   :  { %p1003_p10 = scmp.ne.s32.totalorder %s29_s23, %s1002_s2  ;;  %p1008_p12 = scmp.lt.s32.totalorder %s1002_s2, %s1002_s2 }
  0x1d   :  { %p1009_p13 = por %p1008_p12, %p1007_p11 }
  0x1f   :  { %p1010_p0 = pnand %p1009_p13, %p1003_p10 }
  0x21   :  { %1013 = shalt.err (!%p1010_p0)
}
  0x22   :  { %s1087_s27 = smov 256   ;;  %s1088_s28 = smov 16  }
  0x23   :  { %34 = dma.hbm_to_vmem [thread:$0]  %s1300_s0, 2048, %s29_s23, [#allocation3], %s1087_s27, %s1087_s27, %s1088_s28  }
  0x24   :  { %s1089_s15 = smov [#allocation7]   ;;  %s1090_s19 = smov [#allocation10]  }
  0x25   :  { %s60_s18 = sshll.u32 %s1089_s15, 4  ;;  %s92_s20 = sshll.u32 %s1090_s19, 4  ;;  %s61_s18 = int_to_ptr.vmem [resolvable:$true] %s60_s18  ;;  %s93_s20 = int_to_ptr.vmem [resolvable:$true] %s92_s20 }
  0x26   :  { %s1022_s8 = scalar_lea.vmem %s61_s18, 2048  ;;  %p1027_p2 = scmp.lt.s32.totalorder %s61_s18, %s61_s18 }
  0x27   :  { %p1023_p1 = scmp.ne.s32.totalorder %s61_s18, %s1022_s8  ;;  %p1028_p3 = scmp.lt.s32.totalorder %s1022_s8, %s1022_s8 }
  0x29   :  { %p1029_p4 = por %p1028_p3, %p1027_p2 }
  0x2b   :  { %p1030_p5 = pnand %p1029_p4, %p1023_p1 }
  0x2d   :  { %1033 = shalt.err (!%p1030_p5)
}
  0x2e   :  { %66 = dma.hbm_to_vmem [thread:$0]  %s1306_s6, 2048, %s61_s18, [#allocation6], %s1083_s16, %s1083_s16, %s1084_s17  }
  0x2f   :  { %s1042_s0 = scalar_lea.vmem %s93_s20, 2048  ;;  %p1047_p7 = scmp.lt.s32.totalorder %s93_s20, %s93_s20 }
  0x30   :  { %p1043_p6 = scmp.ne.s32.totalorder %s93_s20, %s1042_s0  ;;  %p1048_p8 = scmp.lt.s32.totalorder %s1042_s0, %s1042_s0 }
  0x32   :  { %p1049_p9 = por %p1048_p8, %p1047_p7 }
  0x34   :  { %p1050_p10 = pnand %p1049_p9, %p1043_p6 }
  0x36   :  { %1053 = shalt.err (!%p1050_p10)
}
  0x37   :  { %98 = dma.hbm_to_vmem [thread:$0]  %s1312_s12, 2048, %s93_s20, [#allocation9], %s1083_s16, %s1083_s16, %s1084_s17  }
  0x38   :  { %1074 = dma.done.wait [#allocation3], 2048  }
  0x39   :  { %1075 = vsyncadd [#allocation3], 4294965248 }
  0x3a   :  { %1076 = dma.done.wait [#allocation6], 6144  }
  0x3b   :  { %1077 = vsyncadd [#allocation6], 4294961152 }
  0x3c   :  { %1078 = dma.done.wait [#allocation9], 4096  }
  0x3d   :  { %1079 = vsyncadd [#allocation9], 4294963200  ;;  %v1091_v0 = vmov 0   ;;  %v268_v1 = vld [vmem:[#allocation5 + $0xf8] sm:$0xff]  ;;  %v267_v3 = vld [vmem:[#allocation5 + $0xf0] sm:$0xff]  ;;  %vm285_vm0 = vcmask 1041409  }
  0x3e   :  { %949 = vset.pattern.permute.xlu0 %v1091_v0  ;;  %v252_v2 = vld [vmem:[#allocation5 + $0x78] sm:$0xff]  ;;  %745 = vmatprep.subr.mxu0 %v268_v1  ;;  %v251_v4 = vld [vmem:[#allocation5 + $0x70] sm:$0xff]  ;;  %v266_v5 = vld [vmem:[#allocation5 + $0xe8] sm:$0xff]  ;;  %vm287_vm1 = vcmask 1042434   ;;  %vm289_vm2 = vcmask 1043459   ;;  %vm291_vm3 = vcmask 1044484  }
  0x3f   :  { %746 = vmatpush3.msra.mxu0 %v252_v2  ;;  %v250_v6 = vld [vmem:[#allocation5 + $0x68] sm:$0xff]  ;;  %v265_v7 = vld [vmem:[#allocation5 + $0xe0] sm:$0xff]  ;;  %v264_v9 = vld [vmem:[#allocation5 + $0xd8] sm:$0xff]  ;;  %vm293_vm4 = vcmask 1045509   ;;  %vm295_vm5 = vcmask 1046534   ;;  %vm297_vm6 = vcmask 1047559  }
  0x40   :  { %747 = vmatprep.subr.mxu0 %v267_v3  ;;  %v249_v8 = vld [vmem:[#allocation5 + $0x60] sm:$0xff]  ;;  %v248_v10 = vld [vmem:[#allocation5 + $0x58] sm:$0xff]  ;;  %v263_v11 = vld [vmem:[#allocation5 + $0xd0] sm:$0xff]  ;;  %vm1093_vm7 = vmmov 0   ;;  %s1094_s18 = smov [#allocation11]  }
  0x41   :  { %748 = vmatpush3.msra.mxu0 %v251_v4  ;;  %v247_v12 = vld [vmem:[#allocation5 + $0x50] sm:$0xff]  ;;  %v262_v13 = vld [vmem:[#allocation5 + $0xc8] sm:$0xff]  ;;  %v261_v15 = vld [vmem:[#allocation5 + $0xc0] sm:$0xff]  ;;  %s726_s19 = sshll.u32 %s1094_s18, 4  ;;  %s727_s19 = int_to_ptr.vmem [resolvable:$true] %s726_s19 }
  0x42   :  { %749 = vmatprep.subr.mxu0 %v266_v5  ;;  %v246_v14 = vld [vmem:[#allocation5 + $0x48] sm:$0xff]  ;;  %v127_v17 = vld [vmem:[#allocation2 + $0x18] sm:$0xff]  ;;  %v245_v27 = vld [vmem:[#allocation5 + $0x40] sm:$0xff]  ;;  %p1059_p12 = scmp.lt.s32.totalorder %s727_s19, %s727_s19 }
  0x43   :  { %750 = vmatpush3.msra.mxu0 %v250_v6  ;;  %v125_v16 = vld [vmem:[#allocation2 + $0x8] sm:$0xff]  ;;  %v131_v19 = vld [vmem:[#allocation2 + $0x38] sm:$0xff]  ;;  %v158_v24 = vrot.slane %v127_v17, 4  ;;  %v259_v43 = vld [vmem:[#allocation5 + $0xb0] sm:$0xff] }
  0x44   :  { %751 = vmatprep.subr.mxu0 %v265_v7  ;;  %v129_v18 = vld [vmem:[#allocation2 + $0x28] sm:$0xff]  ;;  %v146_v20 = vrot.slane %v125_v16, 4  ;;  %v135_v22 = vld [vmem:[#allocation2 + $0x58] sm:$0xff]  ;;  %v182_v26 = vrot.slane %v131_v19, 4  ;;  %v236_v48 = vld [vmem:[%s1301_s1] sm:$0xff] }
  0x45   :  { %752 = vmatpush3.msra.mxu0 %v249_v8  ;;  %v133_v21 = vld [vmem:[#allocation2 + $0x48] sm:$0xff]  ;;  %v170_v25 = vrot.slane %v129_v18, 4  ;;  %v139_v28 = vld [vmem:[#allocation2 + $0x78] sm:$0xff]  ;;  %v206_v31 = vrot.slane %v135_v22, 4  ;;  %v159_v34 = vadd.f32 %v158_v24, %v127_v17  ;;  %v243_v49 = vld [vmem:[#allocation5 + $0x30] sm:$0xff]  ;;  %380 = vperm.xlu0 %949, %v236_v48  }
  0x46   :  { %753 = vmatprep.subr.mxu0 %v264_v9  ;;  %v137_v23 = vld [vmem:[#allocation2 + $0x68] sm:$0xff]  ;;  %v147_v29 = vadd.f32 %v146_v20, %v125_v16  ;;  %v194_v30 = vrot.slane %v133_v21, 4  ;;  %v260_v33 = vld [vmem:[#allocation5 + $0xb8] sm:$0xff]  ;;  %v183_v36 = vadd.f32 %v182_v26, %v131_v19  ;;  %v230_v37 = vrot.slane %v139_v28, 4  ;;  %v257_v0 = vld [vmem:[#allocation5 + $0xa0] sm:$0xff] }
  0x47   :  { %754 = vmatpush3.msra.mxu0 %v248_v10  ;;  %v218_v32 = vrot.slane %v137_v23, 4  ;;  %v171_v35 = vadd.f32 %v170_v25, %v129_v18  ;;  %v244_v38 = vld [vmem:[#allocation5 + $0x38] sm:$0xff]  ;;  %v207_v41 = vadd.f32 %v206_v31, %v135_v22  ;;  %v160_v44 = vrot.slane %v159_v34, 2  ;;  %v258_v54 = vld [vmem:[#allocation5 + $0xa8] sm:$0xff]  ;;  %v124_v5 = vld [vmem:[#allocation2] sm:$0xff] }
  0x48   :  { %755 = vmatprep.subr.mxu0 %v263_v11  ;;  %v148_v39 = vrot.slane %v147_v29, 2  ;;  %v195_v40 = vadd.f32 %v194_v30, %v133_v21  ;;  %v184_v46 = vrot.slane %v183_v36, 2  ;;  %v231_v47 = vadd.f32 %v230_v37, %v139_v28  ;;  %v242_v59 = vld [vmem:[#allocation5 + $0x28] sm:$0xff]  ;;  %v241_v6 = vld [vmem:[#allocation5 + $0x20] sm:$0xff]  ;;  %v126_v11 = vld [vmem:[#allocation2 + $0x10] sm:$0xff] }
  0x49   :  { %756 = vmatpush3.msra.mxu0 %v247_v12  ;;  %v219_v42 = vadd.f32 %v218_v32, %v137_v23  ;;  %v172_v45 = vrot.slane %v171_v35, 2  ;;  %v208_v52 = vrot.slane %v207_v41, 2  ;;  %v161_v55 = vadd.f32 %v160_v44, %v159_v34  ;;  %v128_v12 = vld [vmem:[#allocation2 + $0x20] sm:$0xff]  ;;  %v130_v18 = vld [vmem:[#allocation2 + $0x30] sm:$0xff]  ;;  %v240_v20 = vld [vmem:[#allocation5 + $0x18] sm:$0xff] }
  0x4a   :  { %757 = vmatprep.subr.mxu0 %v262_v13  ;;  %v149_v50 = vadd.f32 %v148_v39, %v147_v29  ;;  %v196_v51 = vrot.slane %v195_v40, 2  ;;  %v185_v57 = vadd.f32 %v184_v46, %v183_v36  ;;  %v232_v58 = vrot.slane %v231_v47, 2  ;;  %v256_v13 = vld [vmem:[#allocation5 + $0x98] sm:$0xff]  ;;  %v132_v19 = vld [vmem:[#allocation2 + $0x40] sm:$0xff]  ;;  %v134_v24 = vld [vmem:[#allocation2 + $0x50] sm:$0xff] }
  0x4b   :  { %758 = vmatpush3.msra.mxu0 %v246_v14  ;;  %v220_v53 = vrot.slane %v219_v42, 2  ;;  %v173_v56 = vadd.f32 %v172_v45, %v171_v35  ;;  %v209_v62 = vadd.f32 %v208_v52, %v207_v41  ;;  %v162_v1 = vrot.slane %v161_v55, 1  ;;  %v255_v26 = vld [vmem:[#allocation5 + $0x90] sm:$0xff]  ;;  %v254_v36 = vld [vmem:[#allocation5 + $0x88] sm:$0xff]  ;;  %v253_v46 = vld [vmem:[#allocation5 + $0x80] sm:$0xff] }
  0x4c   :  { %759 = vmatprep.subr.mxu0 %v261_v15  ;;  %v150_v60 = vrot.slane %v149_v50, 1  ;;  %v197_v61 = vadd.f32 %v196_v51, %v195_v40  ;;  %v186_v3 = vrot.slane %v185_v57, 1  ;;  %v233_v4 = vadd.f32 %v232_v58, %v231_v47  ;;  %v239_v31 = vld [vmem:[#allocation5 + $0x10] sm:$0xff]  ;;  %v238_v41 = vld [vmem:[#allocation5 + $0x8] sm:$0xff]  ;;  %v136_v48 = vld [vmem:[#allocation2 + $0x60] sm:$0xff] }
  0x4d   :  { %760 = vmatpush3.msra.mxu0 %v245_v27  ;;  %v221_v63 = vadd.f32 %v220_v53, %v219_v42  ;;  %v174_v2 = vrot.slane %v173_v56, 1  ;;  %v210_v9 = vrot.slane %v209_v62, 1  ;;  %v163_v14 = vadd.f32 %v162_v1, %v161_v55  ;;  %v237_v52 = vld [vmem:[#allocation5] sm:$0xff] }
  0x4e   :  { %761 = vmatprep.subr.mxu0 %v260_v33  ;;  %v151_v7 = vadd.f32 %v150_v60, %v149_v50  ;;  %v198_v8 = vrot.slane %v197_v61, 1  ;;  %v187_v16 = vadd.f32 %v186_v3, %v185_v57  ;;  %v234_v17 = vrot.slane %v233_v4, 1 }
  0x4f   :  { %762 = vmatpush3.msra.mxu0 %v244_v38  ;;  %v222_v10 = vrot.slane %v221_v63, 1  ;;  %v175_v15 = vadd.f32 %v174_v2, %v173_v56  ;;  %v211_v22 = vadd.f32 %v210_v9, %v209_v62  ;;  %v140_v25 = vrot.slane %v124_v5, 4 }
  0x50   :  { %763 = vmatprep.subr.mxu0 %v259_v43  ;;  %v199_v21 = vadd.f32 %v198_v8, %v197_v61  ;;  %v235_v27 = vadd.f32 %v234_v17, %v233_v4  ;;  %v299_v28 = vsel %vm285_vm0, %v163_v14, %v151_v7  ;;  %v152_v29 = vrot.slane %v126_v11, 4 }
  0x51   :  { %764 = vmatpush3.msra.mxu0 %v243_v49  ;;  %v223_v23 = vadd.f32 %v222_v10, %v221_v63  ;;  %v164_v30 = vrot.slane %v128_v12, 4  ;;  %v300_v32 = vsel %vm287_vm1, %v175_v15, %v299_v28  ;;  %v141_v33 = vadd.f32 %v140_v25, %v124_v5 }
  0x52   :  { %765 = vmatprep.subr.mxu0 %v258_v54  ;;  %v176_v34 = vrot.slane %v130_v18, 4  ;;  %v188_v35 = vrot.slane %v132_v19, 4  ;;  %v301_v37 = vsel %vm289_vm2, %v187_v16, %v300_v32  ;;  %v153_v38 = vadd.f32 %v152_v29, %v126_v11  ;;  %v138_v54 = vld [vmem:[#allocation2 + $0x70] sm:$0xff] }
  0x53   :  { %766 = vmatpush3.msra.mxu0 %v242_v59  ;;  %v165_v39 = vadd.f32 %v164_v30, %v128_v12  ;;  %v200_v40 = vrot.slane %v134_v24, 4  ;;  %v302_v42 = vsel %vm291_vm3, %v199_v21, %v301_v37  ;;  %v142_v43 = vrot.slane %v141_v33, 2 }
  0x54   :  { %767 = vmatprep.subr.mxu0 %v257_v0  ;;  %v177_v44 = vadd.f32 %v176_v34, %v130_v18  ;;  %v189_v45 = vadd.f32 %v188_v35, %v132_v19  ;;  %v303_v47 = vsel %vm293_vm4, %v211_v22, %v302_v42  ;;  %v154_v49 = vrot.slane %v153_v38, 2  ;;  %v430_v42 = vld [vmem:[#allocation7 + $0x68] sm:$0xff] }
  0x55   :  { %768 = vmatpush3.msra.mxu0 %v241_v6  ;;  %v166_v50 = vrot.slane %v165_v39, 2  ;;  %v201_v51 = vadd.f32 %v200_v40, %v134_v24  ;;  %v304_v53 = vsel %vm295_vm5, %v223_v23, %v303_v47  ;;  %v143_v55 = vadd.f32 %v142_v43, %v141_v33  ;;  %v429_v43 = vld [vmem:[#allocation7 + $0x60] sm:$0xff] }
  0x56   :  { %769 = vmatprep.subr.mxu0 %v256_v13  ;;  %v178_v56 = vrot.slane %v177_v44, 2  ;;  %v190_v57 = vrot.slane %v189_v45, 2  ;;  %v305_v58 = vsel %vm297_vm6, %v235_v27, %v304_v53  ;;  %v155_v59 = vadd.f32 %v154_v49, %v153_v38  ;;  %v427_v49 = vld [vmem:[#allocation7 + $0x50] sm:$0xff] }
  0x57   :  { %770 = vmatpush3.msra.mxu0 %v240_v20  ;;  %v167_v60 = vadd.f32 %v166_v50, %v165_v39  ;;  %v202_v61 = vrot.slane %v201_v51, 2  ;;  %372 = vmatprep.mubr.f32.mxu0 %v305_v58  ;;  %v144_v62 = vrot.slane %v143_v55, 1  ;;  %v212_v1 = vrot.slane %v136_v48, 4  ;;  %v432_v39 = vld [vmem:[#allocation7 + $0x78] sm:$0xff]  ;;  %v426_v50 = vld [vmem:[#allocation7 + $0x48] sm:$0xff]  ;;  %v423_v53 = vld [vmem:[#allocation7 + $0x30] sm:$0xff] }
  0x58   :  { %771 = vmatprep.subr.mxu0 %v255_v26  ;;  %v179_v63 = vadd.f32 %v178_v56, %v177_v44  ;;  %v191_v0 = vadd.f32 %v190_v57, %v189_v45  ;;  %v156_v2 = vrot.slane %v155_v59, 1  ;;  %v224_v5 = vrot.slane %v138_v54, 4  ;;  %v420_v56 = vld [vmem:[#allocation7 + $0x18] sm:$0xff]  ;;  %v419_v57 = vld [vmem:[#allocation7 + $0x10] sm:$0xff]  ;;  %v418_v58 = vld [vmem:[#allocation7 + $0x8] sm:$0xff] }
  0x59   :  { %772 = vmatpush3.msra.mxu0 %v239_v31  ;;  %v168_v3 = vrot.slane %v167_v60, 1  ;;  %v203_v4 = vadd.f32 %v202_v61, %v201_v51  ;;  %v145_v6 = vadd.f32 %v144_v62, %v143_v55  ;;  %v213_v9 = vadd.f32 %v212_v1, %v136_v48  ;;  %v428_v48 = vld [vmem:[#allocation7 + $0x58] sm:$0xff]  ;;  %v425_v51 = vld [vmem:[#allocation7 + $0x40] sm:$0xff]  ;;  %v524_v61 = vld [vmem:[#allocation8 + $0x70] sm:$0xff] }
  0x5a   :  { %773 = vmatprep.subr.mxu0 %v254_v36  ;;  %v180_v7 = vrot.slane %v179_v63, 1  ;;  %v192_v8 = vrot.slane %v191_v0, 1  ;;  %v157_v10 = vadd.f32 %v156_v2, %v155_v59  ;;  %v225_v13 = vadd.f32 %v224_v5, %v138_v54  ;;  %v737_v36 = vld [vmem:[%s1303_s3] ss:$0 sm:$0xff]  ;;  %v422_v54 = vld [vmem:[#allocation7 + $0x28] sm:$0xff]  ;;  %v520_v1 = vld [vmem:[#allocation8 + $0x50] sm:$0xff] }
  0x5b   :  { %774 = vmatpush3.msra.mxu0 %v238_v41  ;;  %v169_v11 = vadd.f32 %v168_v3, %v167_v60  ;;  %v204_v12 = vrot.slane %v203_v4, 1  ;;  %v214_v16 = vrot.slane %v213_v9, 2  ;;  %v1092_v40 = vmov 0.0   ;;  %v431_v41 = vld [vmem:[#allocation7 + $0x70] sm:$0xff]  ;;  %v421_v55 = vld [vmem:[#allocation7 + $0x20] sm:$0xff]  ;;  %v525_v60 = vld [vmem:[#allocation8 + $0x78] sm:$0xff] }
  0x5c   :  { %775 = vmatprep.subr.mxu0 %v253_v46  ;;  %v181_v14 = vadd.f32 %v180_v7, %v179_v63  ;;  %v193_v15 = vadd.f32 %v192_v8, %v191_v0  ;;  %v226_v18 = vrot.slane %v225_v13, 2  ;;  %v286_v19 = vsel %vm285_vm0, %v157_v10, %v145_v6  ;;  %831 = vmatprep.subr.mxu1 %v1092_v40  ;;  %v417_v59 = vld [vmem:[#allocation7] sm:$0xff]  ;;  %v523_v62 = vld [vmem:[#allocation8 + $0x68] sm:$0xff]  ;;  %v521_v0 = vld [vmem:[#allocation8 + $0x58] sm:$0xff] }
  0x5d   :  { %776 = vmatpush3.msra.mxu0 %v237_v52  ;;  %v205_v17 = vadd.f32 %v204_v12, %v203_v4  ;;  %v215_v20 = vadd.f32 %v214_v16, %v213_v9  ;;  %v288_v21 = vsel %vm287_vm1, %v169_v11, %v286_v19  ;;  %832 = vmatpush3.msra.mxu1 %v432_v39  ;;  %v424_v52 = vld [vmem:[#allocation7 + $0x38] sm:$0xff]  ;;  %v522_v63 = vld [vmem:[#allocation8 + $0x60] sm:$0xff]  ;;  %v519_v2 = vld [vmem:[#allocation8 + $0x48] sm:$0xff] }
  0x5e   :  { %v227_v22 = vadd.f32 %v226_v18, %v225_v13  ;;  %v290_v23 = vsel %vm289_vm2, %v181_v14, %v288_v21  ;;  %866 = vmatprep.subr.mxu0 %v1092_v40  ;;  %833 = vmatprep.subr.mxu1 %v1092_v40  ;;  %v518_v3 = vld [vmem:[#allocation8 + $0x40] sm:$0xff]  ;;  %v517_v4 = vld [vmem:[#allocation8 + $0x38] sm:$0xff]  ;;  %v516_v5 = vld [vmem:[#allocation8 + $0x30] sm:$0xff] }
  0x5f   :  { %v216_v24 = vrot.slane %v215_v20, 1  ;;  %v292_v25 = vsel %vm291_vm3, %v193_v15, %v290_v23  ;;  %834 = vmatpush3.msra.mxu1 %v431_v41  ;;  %863 = vmatprep.mubr.msk.f32.mxu1 %vm1093_vm7, %v1092_v40  ;;  %v515_v6 = vld [vmem:[#allocation8 + $0x28] sm:$0xff]  ;;  %v514_v7 = vld [vmem:[#allocation8 + $0x20] sm:$0xff]  ;;  %v513_v8 = vld [vmem:[#allocation8 + $0x18] sm:$0xff] }
  0x60   :  { %v228_v26 = vrot.slane %v227_v22, 1  ;;  %v294_v27 = vsel %vm293_vm4, %v205_v17, %v292_v25  ;;  %835 = vmatprep.subr.mxu1 %v1092_v40  ;;  %v738_v13 = vld [vmem:[%s1304_s4] ss:$0 sm:$0xff]  ;;  %v512_v18 = vld [vmem:[#allocation8 + $0x10] sm:$0xff]  ;;  %v511_v19 = vld [vmem:[#allocation8 + $0x8] sm:$0xff] }
  0x61   :  { %v217_v28 = vadd.f32 %v216_v24, %v215_v20  ;;  %836 = vmatpush3.msra.mxu1 %v430_v42  ;;  %v739_v15 = vld [vmem:[%s1305_s5] ss:$0 sm:$0xff]  ;;  %v637_v39 = vld [vmem:[#allocation10 + $0x50] sm:$0xff]  ;;  %v636_v41 = vld [vmem:[#allocation10 + $0x48] sm:$0xff] }
  0x62   :  { %v229_v29 = vadd.f32 %v228_v26, %v227_v22  ;;  %837 = vmatprep.subr.mxu1 %v1092_v40  ;;  %v510_v20 = vld [vmem:[#allocation8] sm:$0xff] }
  0x63   :  { %v296_v30 = vsel %vm295_vm5, %v217_v28, %v294_v27  ;;  %838 = vmatpush3.msra.mxu1 %v429_v43  ;;  %v740_v21 = vld [vmem:[%s1307_s7] ss:$0 sm:$0xff]  ;;  %v634_v43 = vld [vmem:[#allocation10 + $0x38] sm:$0xff] }
  0x64   :  { %v298_v31 = vsel %vm297_vm6, %v229_v29, %v296_v30  ;;  %839 = vmatprep.subr.mxu1 %v1092_v40  ;;  %v741_v26 = vld [vmem:[%s1309_s9] ss:$0 sm:$0xff]  ;;  %v642_v30 = vld [vmem:[#allocation10 + $0x78] sm:$0xff] }
  0x65   :  { %373 = vmatmul.mubr.f32.vlgmr.msra.gmra.mxu0 %v298_v31  ;;  %840 = vmatpush3.msra.mxu1 %v428_v48  ;;  %v641_v31 = vld [vmem:[#allocation10 + $0x70] sm:$0xff]  ;;  %v635_v42 = vld [vmem:[#allocation10 + $0x40] sm:$0xff] }
  0x66   :  { %841 = vmatprep.subr.mxu1 %v1092_v40  ;;  %898 = vmatprep.mubr.msk.f32.mxu0 %vm1093_vm7, %v1092_v40  ;;  %v629_v48 = vld [vmem:[#allocation10 + $0x10] sm:$0xff] }
  0x67   :  { %842 = vmatpush3.msra.mxu1 %v427_v49  ;;  %867 = vmatpush3.msra.mxu0 %v525_v60  ;;  %v628_v49 = vld [vmem:[#allocation10 + $0x8] sm:$0xff] }
  0x68   :  { %843 = vmatprep.subr.mxu1 %v1092_v40  ;;  %868 = vmatprep.subr.mxu0 %v1092_v40 }
  0x69   :  { %844 = vmatpush3.msra.mxu1 %v426_v50  ;;  %869 = vmatpush3.msra.mxu0 %v524_v61  ;;  %v627_v50 = vld [vmem:[#allocation10] sm:$0xff] }
  0x6a   :  { %845 = vmatprep.subr.mxu1 %v1092_v40  ;;  %870 = vmatprep.subr.mxu0 %v1092_v40 }
  0x6b   :  { %846 = vmatpush3.msra.mxu1 %v425_v51  ;;  %871 = vmatpush3.msra.mxu0 %v523_v62 }
  0x6c   :  { %847 = vmatprep.subr.mxu1 %v1092_v40  ;;  %872 = vmatprep.subr.mxu0 %v1092_v40 }
  0x6d   :  { %848 = vmatpush3.msra.mxu1 %v424_v52  ;;  %873 = vmatpush3.msra.mxu0 %v522_v63 }
  0x6e   :  { %849 = vmatprep.subr.mxu1 %v1092_v40  ;;  %874 = vmatprep.subr.mxu0 %v1092_v40 }
  0x6f   :  { %850 = vmatpush3.msra.mxu1 %v423_v53  ;;  %875 = vmatpush3.msra.mxu0 %v521_v0 }
  0x70   :  { %851 = vmatprep.subr.mxu1 %v1092_v40  ;;  %876 = vmatprep.subr.mxu0 %v1092_v40 }
  0x71   :  { %852 = vmatpush3.msra.mxu1 %v422_v54  ;;  %877 = vmatpush3.msra.mxu0 %v520_v1 }
  0x72   :  { %853 = vmatprep.subr.mxu1 %v1092_v40  ;;  %878 = vmatprep.subr.mxu0 %v1092_v40 }
  0x73   :  { %854 = vmatpush3.msra.mxu1 %v421_v55  ;;  %879 = vmatpush3.msra.mxu0 %v519_v2  ;;  %v742_v55 = vld [vmem:[%s1310_s10] ss:$0 sm:$0xff]  ;;  %s1054_s10 = scalar_lea.vmem %s727_s19, 128 }
  0x74   :  { %855 = vmatprep.subr.mxu1 %v1092_v40  ;;  %880 = vmatprep.subr.mxu0 %v1092_v40  ;;  %p1055_p11 = scmp.ne.s32.totalorder %s727_s19, %s1054_s10  ;;  %p1060_p13 = scmp.lt.s32.totalorder %s1054_s10, %s1054_s10 }
  0x75   :  { %856 = vmatpush3.msra.mxu1 %v420_v56  ;;  %881 = vmatpush3.msra.mxu0 %v518_v3 }
  0x76   :  { %857 = vmatprep.subr.mxu1 %v1092_v40  ;;  %882 = vmatprep.subr.mxu0 %v1092_v40  ;;  %p1061_p0 = por %p1060_p13, %p1059_p12 }
  0x77   :  { %858 = vmatpush3.msra.mxu1 %v419_v57  ;;  %883 = vmatpush3.msra.mxu0 %v517_v4  ;;  %v743_v57 = vld [vmem:[%s1311_s11] ss:$0 sm:$0xff] }
  0x78   :  { %859 = vmatprep.subr.mxu1 %v1092_v40  ;;  %884 = vmatprep.subr.mxu0 %v1092_v40  ;;  %p1062_p1 = pnand %p1061_p0, %p1055_p11 }
  0x79   :  { %860 = vmatpush3.msra.mxu1 %v418_v58  ;;  %885 = vmatpush3.msra.mxu0 %v516_v5 }
  0x7a   :  { %861 = vmatprep.subr.mxu1 %v1092_v40  ;;  %886 = vmatprep.subr.mxu0 %v1092_v40 }
  0x7b   :  { %862 = vmatpush3.msra.mxu1 %v417_v59  ;;  %887 = vmatpush3.msra.mxu0 %v515_v6 }
  0x7c   :  { %901 = vmatprep.subr.mxu1 %v1092_v40  ;;  %888 = vmatprep.subr.mxu0 %v1092_v40 }
  0x7d   :  { %889 = vmatpush3.msra.mxu0 %v514_v7 }
  0x7e   :  { %890 = vmatprep.subr.mxu0 %v1092_v40 }
  0x7f   :  { %891 = vmatpush3.msra.mxu0 %v513_v8 }
  0x80   :  { %892 = vmatprep.subr.mxu0 %v1092_v40 }
  0x81   :  { %893 = vmatpush3.msra.mxu0 %v512_v18 }
  0x82   :  { %894 = vmatprep.subr.mxu0 %v1092_v40 }
  0x83   :  { %895 = vmatpush3.msra.mxu0 %v511_v19 }
  0x84   :  { %896 = vmatprep.subr.mxu0 %v1092_v40 }
  0x85   :  { %897 = vmatpush3.msra.mxu0 %v510_v20 }
  0xc0   :  { %v381_v34 = vpop.permute.xlu0 %380 }
 0x125   :  { %v777_v32 = vpop.f32.mrf.mxu0 }
 0x127   :  { %v778_v33 = vpop.f32.mrf.mxu0 }
 0x128   :  { %v779_v35 = vadd.f32 %v778_v33, %v777_v32  ;;  %v640_v32 = vld [vmem:[#allocation10 + $0x68] sm:$0xff]  ;;  %v639_v33 = vld [vmem:[#allocation10 + $0x60] sm:$0xff] }
 0x12a   :  { %v383_v37 = vmul.f32 %v779_v35, %v381_v34 }
 0x12c   :  { %v390_v38 = vadd.f32 %v737_v36, %v383_v37 }
 0x12e   :  { %391 = vadd.xlane.f32.xlu0 %v390_v38 }
 0x1b7   :  { %v392_v44 = vpop.xlane.xlu0 %391 }
 0x1b8   :  { %v394_v45 = vmul.f32 0.0078125, %v392_v44  ;;  %v633_v44 = vld [vmem:[#allocation10 + $0x30] sm:$0xff] }
 0x1ba   :  { %v1223_v46 = vsub.f32 %v390_v38, %v394_v45  ;;  %v638_v38 = vld [vmem:[#allocation10 + $0x58] sm:$0xff]  ;;  %v632_v45 = vld [vmem:[#allocation10 + $0x28] sm:$0xff] }
 0x1bc   :  { %v396_v47 = vmul.f32 %v1223_v46, %v1223_v46 }
 0x1be   :  { %397 = vadd.xlane.f32.xlu1 %v396_v47  ;;  %v630_v47 = vld [vmem:[#allocation10 + $0x18] sm:$0xff] }
 0x247   :  { %v398_v9 = vpop.xlane.xlu1 %397 }
 0x248   :  { %v399_v10 = vmul.f32 0.0078125, %v398_v9 }
 0x24a   :  { %v400_v11 = vadd.f32 1e-05, %v399_v10 }
 0x24c   :  { %950 = vrsqrt.f32 %v400_v11 }
 0x259   :  { %v951_v12 = vpop.eup %950 }
 0x25a   :  { %v402_v14 = vmul.f32 %v951_v12, %v1223_v46  ;;  %v631_v46 = vld [vmem:[#allocation10 + $0x20] sm:$0xff] }
 0x25c   :  { %v409_v16 = vmul.f32 %v738_v13, %v402_v14 }
 0x25e   :  { %v416_v17 = vadd.f32 %v739_v15, %v409_v16 }
 0x260   :  { %864 = vmatmul.mubr.f32.vlgmr.msra.gmra.mxu1 %v416_v17 }
 0x261   :  { %933 = vmatprep.mubr.msk.f32.mxu1 %vm1093_vm7, %v1092_v40  ;;  %902 = vmatpush3.msra.mxu1 %v642_v30 }
 0x262   :  { %903 = vmatprep.subr.mxu1 %v1092_v40 }
 0x263   :  { %904 = vmatpush3.msra.mxu1 %v641_v31 }
 0x264   :  { %905 = vmatprep.subr.mxu1 %v1092_v40 }
 0x265   :  { %906 = vmatpush3.msra.mxu1 %v640_v32 }
 0x266   :  { %907 = vmatprep.subr.mxu1 %v1092_v40 }
 0x267   :  { %908 = vmatpush3.msra.mxu1 %v639_v33 }
 0x268   :  { %909 = vmatprep.subr.mxu1 %v1092_v40 }
 0x269   :  { %910 = vmatpush3.msra.mxu1 %v638_v38 }
 0x26a   :  { %911 = vmatprep.subr.mxu1 %v1092_v40 }
 0x26b   :  { %912 = vmatpush3.msra.mxu1 %v637_v39 }
 0x26c   :  { %913 = vmatprep.subr.mxu1 %v1092_v40 }
 0x26d   :  { %914 = vmatpush3.msra.mxu1 %v636_v41 }
 0x26e   :  { %915 = vmatprep.subr.mxu1 %v1092_v40 }
 0x26f   :  { %916 = vmatpush3.msra.mxu1 %v635_v42 }
 0x270   :  { %917 = vmatprep.subr.mxu1 %v1092_v40 }
 0x271   :  { %918 = vmatpush3.msra.mxu1 %v634_v43 }
 0x272   :  { %919 = vmatprep.subr.mxu1 %v1092_v40 }
 0x273   :  { %920 = vmatpush3.msra.mxu1 %v633_v44 }
 0x274   :  { %921 = vmatprep.subr.mxu1 %v1092_v40 }
 0x275   :  { %922 = vmatpush3.msra.mxu1 %v632_v45 }
 0x276   :  { %923 = vmatprep.subr.mxu1 %v1092_v40 }
 0x277   :  { %924 = vmatpush3.msra.mxu1 %v631_v46 }
 0x278   :  { %925 = vmatprep.subr.mxu1 %v1092_v40 }
 0x279   :  { %926 = vmatpush3.msra.mxu1 %v630_v47 }
 0x27a   :  { %927 = vmatprep.subr.mxu1 %v1092_v40 }
 0x27b   :  { %928 = vmatpush3.msra.mxu1 %v629_v48 }
 0x27c   :  { %929 = vmatprep.subr.mxu1 %v1092_v40 }
 0x27d   :  { %930 = vmatpush3.msra.mxu1 %v628_v49 }
 0x27e   :  { %931 = vmatprep.subr.mxu1 %v1092_v40  ;;  %v744_v40 = vld [vmem:[%s1313_s13] ss:$0 sm:$0xff] }
 0x27f   :  { %932 = vmatpush3.msra.mxu1 %v627_v50 }
 0x320   :  { %v505_v22 = vpop.f32.mrf.mxu1 }
 0x321   :  { %v506_v23 = vadd.f32 %v740_v21, %v505_v22 }
 0x322   :  { %v865_v24 = vpop.f32.mrf.mxu1 }
 0x323   :  { %v509_v25 = vmax.f32 %v506_v23, 0.0 }
 0x325   :  { %899 = vmatmul.mubr.f32.vlgmr.msra.gmra.mxu0 %v509_v25 }
 0x3e5   :  { %v598_v27 = vpop.f32.mrf.mxu0 }
 0x3e6   :  { %v599_v28 = vadd.f32 %v741_v26, %v598_v27 }
 0x3e7   :  { %v900_v29 = vpop.f32.mrf.mxu0 }
 0x3e8   :  { %602 = vadd.xlane.f32.xlu1 %v599_v28 }
 0x471   :  { %v603_v34 = vpop.xlane.xlu1 %602 }
 0x472   :  { %v604_v35 = vmul.f32 0.0078125, %v603_v34 }
 0x474   :  { %v605_v36 = vsub.f32 %v599_v28, %v604_v35 }
 0x476   :  { %v606_v37 = vmul.f32 %v605_v36, %v605_v36 }
 0x478   :  { %607 = vadd.xlane.f32.xlu1 %v606_v37 }
 0x501   :  { %v608_v51 = vpop.xlane.xlu1 %607 }
 0x502   :  { %v609_v52 = vmul.f32 0.0078125, %v608_v51 }
 0x504   :  { %v610_v53 = vadd.f32 1e-05, %v609_v52 }
 0x506   :  { %952 = vrsqrt.f32 %v610_v53 }
 0x513   :  { %v953_v54 = vpop.eup %952 }
 0x514   :  { %v612_v56 = vmul.f32 %v953_v54, %v605_v36 }
 0x516   :  { %v619_v58 = vmul.f32 %v742_v55, %v612_v56 }
 0x518   :  { %v626_v59 = vadd.f32 %v743_v57, %v619_v58 }
 0x51a   :  { %934 = vmatmul.mubr.f32.vlgmr.msra.gmra.mxu1 %v626_v59 }
 0x5da   :  { %v715_v60 = vpop.f32.mrf.mxu1 }
 0x5db   :  { %v716_v61 = vadd.f32 %v744_v40, %v715_v60 }
 0x5dc   :  { %v935_v62 = vpop.f32.mrf.mxu1 }
 0x5dd   :  { %719 = vst [vmem:[#allocation11] sm:$0xff] %v716_v61 }
 0x5de   :  { %1065 = shalt.err (!%p1062_p1)
}
 0x5df   :  { %729 = dma.vmem_to_hbm [thread:$0]  %s727_s19, 128, %s1314_s14, [#allocation4]  }
 0x5e0   :  { %1080 = dma.done.wait [#allocation4], 128  }
 0x5e1   :  { %1081 = vsyncadd [#allocation4], 4294967168 }
 0x5e2   :  { %733 = vsyncpa [#allocation3], 1 }
 0x5e3   :  { %734 = vsyncpa [#allocation6], 1 }
 0x5e4   :  { %735 = vsyncpa [#allocation9], 1 }
 0x5e5   :  { %736 = vsyncpa [#allocation4], 1 }

</bundles_post_ra>
